<compile_context>
chip_gen: v6e
topology: v6e:2x2x1
jax: 0.10.0
libtpu: 0.0.40
codegen_flags: <defaults>
</compile_context>

<pallas_src>
import functools

import jax
import jax.numpy as jnp
import numpy as np
from jax.experimental import pallas as pl
from jax.experimental.pallas import tpu as pltpu

EPS = 1e-5
NEG_SLOPE = 0.01
LANE = 128


def _round_up(n, m):
    return ((n + m - 1) // m) * m


def _leaky_relu(h):
    return jnp.where(h >= 0, h, NEG_SLOPE * h)


# ----------------------------------------------------------------------------
# Parameter packing
# ----------------------------------------------------------------------------
def pack_params(params, mxu_dtype=jnp.bfloat16):
    """Lane-pad all feature dims to multiples of 128, cast matmul weights to
    the MXU dtype (bf16 by default), and pack the tiny per-layer vectors
    (gamma1, beta1, gamma2, beta2, b3) into one (8, 128k) f32 operand.

    b1 / b2 are intentionally dropped: a Linear bias immediately followed by
    training-mode BatchNorm1d has no effect on the output.
    Zero padding is preserved through the bf16 cast, so padded feature lanes
    stay exactly 0 through BN / LeakyReLU / the next matmul.
    """
    (w1, _b1, g1, be1, w2, _b2, g2, be2, w3, b3) = params
    in_dim, h1 = w1.shape
    h2 = w2.shape[1]
    out_dim = w3.shape[1]

    pin = _round_up(in_dim, LANE)
    p1 = _round_up(h1, LANE)
    p2 = _round_up(h2, LANE)
    po = _round_up(out_dim, LANE)
    vw = max(p1, p2, po)

    w1p = jnp.zeros((pin, p1), jnp.float32).at[:in_dim, :h1].set(w1).astype(mxu_dtype)
    w2p = jnp.zeros((p1, p2), jnp.float32).at[:h1, :h2].set(w2).astype(mxu_dtype)
    w3p = jnp.zeros((p2, po), jnp.float32).at[:h2, :out_dim].set(w3).astype(mxu_dtype)

    # rows: 0=gamma1, 1=beta1, 2=gamma2, 3=beta2, 4=b3  (padding lanes stay 0)
    vec = jnp.zeros((8, vw), jnp.float32)
    vec = vec.at[0, :h1].set(g1.reshape(-1))
    vec = vec.at[1, :h1].set(be1.reshape(-1))
    vec = vec.at[2, :h2].set(g2.reshape(-1))
    vec = vec.at[3, :h2].set(be2.reshape(-1))
    vec = vec.at[4, :out_dim].set(b3.reshape(-1))

    dims = dict(in_dim=in_dim, h1=h1, h2=h2, out_dim=out_dim,
                pin=pin, p1=p1, p2=p2, po=po, vw=vw)
    return (w1p, w2p, w3p, vec), dims


# ----------------------------------------------------------------------------
# Fused kernel: grid = (phase, batch_tile)
#   phase 0: accumulate layer-1 sum/sumsq
#   phase 1: normalize layer 1, accumulate layer-2 sum/sumsq
#   phase 2: normalize both layers, emit output
# ----------------------------------------------------------------------------
def _batch_net_kernel(x_ref, w1_ref, w2_ref, w3_ref, vec_ref, o_ref,
                      sum1, sq1, sum2, sq2,
                      *, n_real, tile_b, p1, p2, po, mxu_dtype):
    phase = pl.program_id(0)
    tile = pl.program_id(1)

    @pl.when((phase == 0) & (tile == 0))
    def _init():
        sum1[...] = jnp.zeros_like(sum1)
        sq1[...] = jnp.zeros_like(sq1)
        sum2[...] = jnp.zeros_like(sum2)
        sq2[...] = jnp.zeros_like(sq2)

    # Rows of this tile that belong to the real (unpadded) batch: padded rows
    # are excluded from the BN statistics (they do contribute junk rows to the
    # output slab, which the consumer simply ignores / slices off).
    row = jax.lax.broadcasted_iota(jnp.int32, (tile_b, 1), 0)
    valid = (tile * tile_b + row) < n_real
    inv_n = jnp.float32(1.0 / n_real)

    def accum(h, s_ref, q_ref):
        hm = jnp.where(valid, h, 0.0)
        s_ref[...] += jnp.sum(hm, axis=0, keepdims=True)
        q_ref[...] += jnp.sum(hm * hm, axis=0, keepdims=True)

    def normalize(h, s_ref, q_ref, gamma, beta):
        mu = s_ref[...] * inv_n
        var = jnp.maximum(q_ref[...] * inv_n - mu * mu, 0.0)
        scale = gamma * jax.lax.rsqrt(var + EPS)
        shift = beta - mu * scale
        return _leaky_relu(h * scale + shift)

    # Layer-1 pre-activation (bias b1 cancelled by training-mode BN).
    # Recomputed every phase: cheaper than round-tripping h1 through HBM at
    # these layer widths, and keeps the kernel a single pallas_call.
    h1 = jnp.dot(x_ref[...], w1_ref[...], preferred_element_type=jnp.float32)

    @pl.when(phase == 0)
    def _stats1():
        accum(h1, sum1, sq1)

    def layer2_pre():
        a1 = normalize(h1, sum1, sq1, vec_ref[0:1, :p1], vec_ref[1:2, :p1])
        return jnp.dot(a1.astype(mxu_dtype), w2_ref[...],
                       preferred_element_type=jnp.float32)

    @pl.when(phase == 1)
    def _stats2():
        accum(layer2_pre(), sum2, sq2)

    @pl.when(phase == 2)
    def _final():
        h2 = layer2_pre()
        a2 = normalize(h2, sum2, sq2, vec_ref[2:3, :p2], vec_ref[3:4, :p2])
        out = jnp.dot(a2.astype(mxu_dtype), w3_ref[...],
                      preferred_element_type=jnp.float32)
        out = out + vec_ref[4:5, :po]
        o_ref[...] = out.astype(o_ref.dtype)
    # Note: in phases 0/1 o_ref is never written; the (don't-care) block
    # writebacks are overwritten by phase 2 (the grid runs sequentially).


# ----------------------------------------------------------------------------
# Wrapper
# ----------------------------------------------------------------------------
def batch_net_forward(x, packed, dims, *, tile_batch=512,
                      mxu_dtype=jnp.bfloat16):
    """Returns the padded, lane-dense output slab of shape (Bp, po); the
    logical result is out[:B, :out_dim].  Keeping the padded slab avoids an
    extra HBM round-trip when the consumer can take it directly."""
    w1p, w2p, w3p, vec = packed
    pin, p1, p2, po, vw = dims['pin'], dims['p1'], dims['p2'], dims['po'], dims['vw']
    in_dim = dims['in_dim']
    B = x.shape[0]

    # Batch tile: multiple of 8 sublanes, clamped to the (rounded-up) batch.
    # On v7x (64 MiB VMEM) callers should pass roughly half the v5e/v6e tile.
    TB = _round_up(max(8, min(int(tile_batch), _round_up(B, 8))), 8)
    Bp = _round_up(B, TB)
    T = Bp // TB

    # Pad batch rows + in_dim lanes, cast the MXU LHS once in the wrapper.
    xp = jnp.zeros((Bp, pin), mxu_dtype).at[:B, :in_dim].set(x.astype(mxu_dtype))

    kernel = functools.partial(
        _batch_net_kernel, n_real=B, tile_b=TB,
        p1=p1, p2=p2, po=po, mxu_dtype=mxu_dtype)

    itemsize = 2 if mxu_dtype == jnp.bfloat16 else 4

    # Cost estimate: phase0 does L1, phase1 L1+L2, phase2 L1+L2+L3.
    flops = 2 * Bp * (3 * pin * p1 + 2 * p1 * p2 + p2 * po)
    bytes_accessed = (3 * Bp * pin * itemsize                      # x streamed 3x
                      + (pin * p1 + p1 * p2 + p2 * po) * itemsize  # weights once
                      + 8 * vw * 4
                      + Bp * po * 4)                               # output
    cost = pl.CostEstimate(flops=int(flops),
                           transcendentals=int(3 * T * (p1 + p2)),
                           bytes_accessed=int(bytes_accessed))

    # VMEM budget from the actual tile footprint (double-buffered streams,
    # resident weights, stats scratch, activation slabs), clamped so it is
    # valid on v7x's 64 MiB VMEM as well as v5e/v6e's 128 MiB.
    est = (2 * TB * pin * itemsize                       # x tile, double-buffered
           + 2 * TB * po * 4                             # out tile, double-buffered
           + 2 * (pin * p1 + p1 * p2 + p2 * po) * itemsize
           + 2 * 8 * vw * 4
           + 2 * (p1 + p2) * 4                           # stats scratch
           + 2 * TB * (p1 + p2 + po) * 4)                # intermediate slabs
    vmem_limit = int(min(max(2 * est + (1 << 20), 8 << 20), 48 << 20))

    out_padded = pl.pallas_call(
        kernel,
        out_shape=jax.ShapeDtypeStruct((Bp, po), jnp.float32),
        grid_spec=pltpu.PrefetchScalarGridSpec(
            num_scalar_prefetch=0,
            grid=(3, T),                                  # (phase, batch tile)
            in_specs=[
                pl.BlockSpec((TB, pin), lambda p, t: (t, 0)),   # x: streamed
                pl.BlockSpec((pin, p1), lambda p, t: (0, 0)),   # weights: resident
                pl.BlockSpec((p1, p2), lambda p, t: (0, 0)),
                pl.BlockSpec((p2, po), lambda p, t: (0, 0)),
                pl.BlockSpec((8, vw), lambda p, t: (0, 0)),
            ],
            out_specs=pl.BlockSpec((TB, po), lambda p, t: (t, 0)),
            scratch_shapes=[
                pltpu.VMEM((1, p1), jnp.float32),   # sum1
                pltpu.VMEM((1, p1), jnp.float32),   # sumsq1
                pltpu.VMEM((1, p2), jnp.float32),   # sum2
                pltpu.VMEM((1, p2), jnp.float32),   # sumsq2
            ],
        ),
        compiler_params=pltpu.CompilerParams(
            # Both axes must stay "arbitrary": the tile axis feeds shared BN
            # accumulators.  A v7x 2-TC split would need a cross-core stats
            # combine (CMEM / run_on_first_core) — not implemented here.
            dimension_semantics=("arbitrary", "arbitrary"),
            vmem_limit_bytes=vmem_limit,
        ),
        cost_estimate=cost,
    )(xp, w1p, w2p, w3p, vec)

    return out_padded


# ----------------------------------------------------------------------------
# Init + references
# ----------------------------------------------------------------------------
def init_params(key, in_dim, n_hidden_1, n_hidden_2, out_dim):
    """Deterministic synthetic init (shapes match Batch_Net.__init__),
    PyTorch-style uniform(-1/sqrt(fan_in), 1/sqrt(fan_in)) for Linear."""
    k1, k2, k3, kb1, kb2, kb3 = jax.random.split(key, 6)

    def lin(kw, kb, fan_in, fan_out):
        bound = 1.0 / np.sqrt(fan_in)
        w = jax.random.uniform(kw, (fan_in, fan_out), jnp.float32, -bound, bound)
        b = jax.random.uniform(kb, (1, fan_out), jnp.float32, -bound, bound)
        return w, b

    w1, b1 = lin(k1, kb1, in_dim, n_hidden_1)
    w2, b2 = lin(k2, kb2, n_hidden_1, n_hidden_2)
    w3, b3 = lin(k3, kb3, n_hidden_2, out_dim)

    # BatchNorm1d affine params: PyTorch default gamma=1, beta=0.
    g1 = jnp.ones((1, n_hidden_1), jnp.float32)
    be1 = jnp.zeros((1, n_hidden_1), jnp.float32)
    g2 = jnp.ones((1, n_hidden_2), jnp.float32)
    be2 = jnp.zeros((1, n_hidden_2), jnp.float32)

    return (w1, b1, g1, be1, w2, b2, g2, be2, w3, b3)


def reference_forward_f32(x, params):
    """Full-f32 PyTorch training-mode semantics, INCLUDING the b1/b2 Linear
    biases that the kernel drops (BN cancels them) and with no padding."""
    (w1, b1, g1, be1, w2, b2, g2, be2, w3, b3) = params

    def bn_lrelu(h, g, be):
        mu = jnp.mean(h, axis=0, keepdims=True)
        var = jnp.mean(jnp.square(h - mu), axis=0, keepdims=True)
        h = (h - mu) / jnp.sqrt(var + EPS) * g + be
        return jnp.where(h >= 0, h, NEG_SLOPE * h)

    h = bn_lrelu(x @ w1 + b1, g1, be1)
    h = bn_lrelu(h @ w2 + b2, g2, be2)
    return h @ w3 + b3


def reference_forward_mixed(x, packed, dims):
    """Plain-XLA reference using the SAME mixed-precision recipe as the kernel
    (bf16 MXU operands, f32 accumulation, f32 sum/sumsq BatchNorm).  Used as a
    tight check of the kernel's tiling / two-pass statistics."""
    w1p, w2p, w3p, vec = packed
    pin, p1, p2, po = dims['pin'], dims['p1'], dims['p2'], dims['po']
    in_dim = dims['in_dim']
    B = x.shape[0]

    xb = jnp.zeros((B, pin), w1p.dtype).at[:, :in_dim].set(x.astype(w1p.dtype))

    def bn_lrelu(h, g, be):
        mu = jnp.mean(h, axis=0, keepdims=True)
        var = jnp.maximum(jnp.mean(h * h, axis=0, keepdims=True) - mu * mu, 0.0)
        scale = g * jax.lax.rsqrt(var + EPS)
        shift = be - mu * scale
        return _leaky_relu(h * scale + shift)

    h1 = jnp.dot(xb, w1p, preferred_element_type=jnp.float32)
    a1 = bn_lrelu(h1, vec[0:1, :p1], vec[1:2, :p1])
    h2 = jnp.dot(a1.astype(w2p.dtype), w2p, preferred_element_type=jnp.float32)
    a2 = bn_lrelu(h2, vec[2:3, :p2], vec[3:4, :p2])
    out = jnp.dot(a2.astype(w3p.dtype), w3p, preferred_element_type=jnp.float32)
    return out + vec[4:5, :po]


# ----------------------------------------------------------------------------
if __name__ == "__main__":
    in_dim, n_hidden_1, n_hidden_2, out_dim = 16, 32, 32, 8
    batch = 100        # deliberately NOT a multiple of the batch tile
    tile_batch = 16    # small tile -> 7 grid tiles, exercises cross-tile BN

    key = jax.random.PRNGKey(0)
    kx, kp = jax.random.split(key)
    x = jax.random.normal(kx, (batch, in_dim), jnp.float32)
    params = init_params(kp, in_dim, n_hidden_1, n_hidden_2, out_dim)

    packed, dims = pack_params(params)
    out_padded = batch_net_forward(x, packed, dims, tile_batch=tile_batch)
    out_padded = jax.block_until_ready(out_padded)
    out = np.asarray(out_padded)[:batch, :out_dim]

    # Tight check: same mixed-precision recipe in plain XLA -> verifies the
    # batch tiling, masking and two-pass statistics of the kernel itself.
    ref_mixed = np.asarray(reference_forward_mixed(x, packed, dims))[:, :out_dim]
    np.testing.assert_allclose(out, ref_mixed, rtol=2e-3, atol=2e-3)

    # Semantic check vs full-f32 PyTorch training-mode forward (incl. b1/b2);
    # tolerance covers the intentional bf16 MXU-operand quantization.
    ref_f32 = np.asarray(reference_forward_f32(x, params))
    np.testing.assert_allclose(out, ref_f32, rtol=5e-2, atol=5e-2)

    print("KERNEL_OK")
</pallas_src>

<mosaic_0001>
module attributes {stable_mosaic.version = 11 : i64} {
  func.func @_batch_net_kernel(%arg0: i32, %arg1: i32, %arg2: memref<16x128xbf16, #tpu.memory_space<vmem>>, %arg3: memref<128x128xbf16, #tpu.memory_space<vmem>>, %arg4: memref<128x128xbf16, #tpu.memory_space<vmem>>, %arg5: memref<128x128xbf16, #tpu.memory_space<vmem>>, %arg6: memref<8x128xf32, #tpu.memory_space<vmem>>, %arg7: memref<16x128xf32, #tpu.memory_space<vmem>>, %arg8: memref<1x128xf32, #tpu.memory_space<vmem>>, %arg9: memref<1x128xf32, #tpu.memory_space<vmem>>, %arg10: memref<1x128xf32, #tpu.memory_space<vmem>>, %arg11: memref<1x128xf32, #tpu.memory_space<vmem>>) attributes {dimension_semantics = [#tpu.dimension_semantics<arbitrary>, #tpu.dimension_semantics<arbitrary>], iteration_bounds = array<i64: 3, 7>, scalar_prefetch = 0 : i64, scratch_operands = 4 : i64, tpu.core_type = #tpu.core_type<tc>, window_params = [{transform_indices = @transform_0, window_bounds = array<i64: 16, 128>}, {pipeline_mode = #tpu.pipeline_mode<synchronous>, transform_indices = @transform_1, window_bounds = array<i64: 128, 128>}, {pipeline_mode = #tpu.pipeline_mode<synchronous>, transform_indices = @transform_2, window_bounds = array<i64: 128, 128>}, {pipeline_mode = #tpu.pipeline_mode<synchronous>, transform_indices = @transform_3, window_bounds = array<i64: 128, 128>}, {pipeline_mode = #tpu.pipeline_mode<synchronous>, transform_indices = @transform_4, window_bounds = array<i64: 8, 128>}, {transform_indices = @transform_5, window_bounds = array<i64: 16, 128>}]} {
    %c0_i32 = arith.constant 0 : i32
    %0 = arith.cmpi eq, %arg0, %c0_i32 : i32
    %c0_i32_0 = arith.constant 0 : i32
    %1 = arith.cmpi eq, %arg1, %c0_i32_0 : i32
    %2 = arith.andi %0, %1 : i1
    %3 = arith.extui %2 : i1 to i32
    %c0_i32_1 = arith.constant 0 : i32
    %4 = arith.cmpi ne, %3, %c0_i32_1 : i32
    scf.if %4 {
      %cst_11 = arith.constant 0.000000e+00 : f32
      %23 = vector.broadcast %cst_11 : f32 to vector<1x128xf32>
      %c0_12 = arith.constant 0 : index
      %c0_13 = arith.constant 0 : index
      %24 = vector.load %arg8[%c0_12, %c0_13] : memref<1x128xf32, #tpu.memory_space<vmem>>, vector<1x128xf32>
      tpu.vector_store %arg8[%c0_12, %c0_13], %23 {strides = array<i32>} : memref<1x128xf32, #tpu.memory_space<vmem>>, vector<1x128xf32>,
      %cst_14 = arith.constant 0.000000e+00 : f32
      %25 = vector.broadcast %cst_14 : f32 to vector<1x128xf32>
      %c0_15 = arith.constant 0 : index
      %c0_16 = arith.constant 0 : index
      %26 = vector.load %arg9[%c0_15, %c0_16] : memref<1x128xf32, #tpu.memory_space<vmem>>, vector<1x128xf32>
      tpu.vector_store %arg9[%c0_15, %c0_16], %25 {strides = array<i32>} : memref<1x128xf32, #tpu.memory_space<vmem>>, vector<1x128xf32>,
      %cst_17 = arith.constant 0.000000e+00 : f32
      %27 = vector.broadcast %cst_17 : f32 to vector<1x128xf32>
      %c0_18 = arith.constant 0 : index
      %c0_19 = arith.constant 0 : index
      %28 = vector.load %arg10[%c0_18, %c0_19] : memref<1x128xf32, #tpu.memory_space<vmem>>, vector<1x128xf32>
      tpu.vector_store %arg10[%c0_18, %c0_19], %27 {strides = array<i32>} : memref<1x128xf32, #tpu.memory_space<vmem>>, vector<1x128xf32>,
      %cst_20 = arith.constant 0.000000e+00 : f32
      %29 = vector.broadcast %cst_20 : f32 to vector<1x128xf32>
      %c0_21 = arith.constant 0 : index
      %c0_22 = arith.constant 0 : index
      %30 = vector.load %arg11[%c0_21, %c0_22] : memref<1x128xf32, #tpu.memory_space<vmem>>, vector<1x128xf32>
      tpu.vector_store %arg11[%c0_21, %c0_22], %29 {strides = array<i32>} : memref<1x128xf32, #tpu.memory_space<vmem>>, vector<1x128xf32>,
    } else {
    }
    %5 = tpu.iota {dimensions = array<i32: 0>} : vector<16x1xi32>
    %c16_i32 = arith.constant 16 : i32
    %6 = arith.muli %arg1, %c16_i32 : i32
    %7 = vector.broadcast %6 : i32 to vector<16x1xi32>
    %8 = arith.addi %7, %5 : vector<16x1xi32>
    %c100_i32 = arith.constant 100 : i32
    %9 = vector.broadcast %c100_i32 : i32 to vector<16x1xi32>
    %10 = arith.cmpi slt, %8, %9 : vector<16x1xi32>
    %c0 = arith.constant 0 : index
    %c0_2 = arith.constant 0 : index
    %11 = vector.load %arg2[%c0, %c0_2] : memref<16x128xbf16, #tpu.memory_space<vmem>>, vector<16x128xbf16>
    %c0_3 = arith.constant 0 : index
    %c0_4 = arith.constant 0 : index
    %12 = vector.load %arg3[%c0_3, %c0_4] : memref<128x128xbf16, #tpu.memory_space<vmem>>, vector<128x128xbf16>
    %cst = arith.constant dense<0.000000e+00> : vector<16x128xf32>
    %13 = tpu.matmul %11, %12, %cst {dimension_numbers = #tpu.dot_dimension_numbers<[1], [0], [0], [1], [0, 0, 1, 1], [], []>} : vector<16x128xbf16>, vector<128x128xbf16>, vector<16x128xf32> -> vector<16x128xf32>
    %c0_i32_5 = arith.constant 0 : i32
    %14 = arith.cmpi eq, %arg0, %c0_i32_5 : i32
    %15 = arith.extui %14 : i1 to i32
    %c0_i32_6 = arith.constant 0 : i32
    %16 = arith.cmpi ne, %15, %c0_i32_6 : i32
    scf.if %16 {
      %cst_11 = arith.constant 0.000000e+00 : f32
      %23 = vector.shape_cast %10 : vector<16x1xi1> to vector<16x1xi1>
      %24 = vector.broadcast %23 : vector<16x1xi1> to vector<16x128xi1>
      %25 = vector.broadcast %cst_11 : f32 to vector<16x128xf32>
      %26 = arith.select %24, %13, %25 : vector<16x128xi1>, vector<16x128xf32>
      %c0_12 = arith.constant 0 : index
      %c0_13 = arith.constant 0 : index
      %27 = vector.load %arg8[%c0_12, %c0_13] : memref<1x128xf32, #tpu.memory_space<vmem>>, vector<1x128xf32>
      %cst_14 = arith.constant dense<0.000000e+00> : vector<128xf32>
      %28 = vector.multi_reduction <add>, %26, %cst_14 [0] : vector<16x128xf32> to vector<128xf32>
      %29 = vector.shape_cast %28 : vector<128xf32> to vector<1x128xf32>
      %30 = arith.addf %27, %29 : vector<1x128xf32>
      %c0_15 = arith.constant 0 : index
      %c0_16 = arith.constant 0 : index
      %31 = vector.load %arg8[%c0_15, %c0_16] : memref<1x128xf32, #tpu.memory_space<vmem>>, vector<1x128xf32>
      tpu.vector_store %arg8[%c0_15, %c0_16], %30 {strides = array<i32>} : memref<1x128xf32, #tpu.memory_space<vmem>>, vector<1x128xf32>,
      %c0_17 = arith.constant 0 : index
      %c0_18 = arith.constant 0 : index
      %32 = vector.load %arg9[%c0_17, %c0_18] : memref<1x128xf32, #tpu.memory_space<vmem>>, vector<1x128xf32>
      %33 = arith.mulf %26, %26 : vector<16x128xf32>
      %cst_19 = arith.constant dense<0.000000e+00> : vector<128xf32>
      %34 = vector.multi_reduction <add>, %33, %cst_19 [0] : vector<16x128xf32> to vector<128xf32>
      %35 = vector.shape_cast %34 : vector<128xf32> to vector<1x128xf32>
      %36 = arith.addf %32, %35 : vector<1x128xf32>
      %c0_20 = arith.constant 0 : index
      %c0_21 = arith.constant 0 : index
      %37 = vector.load %arg9[%c0_20, %c0_21] : memref<1x128xf32, #tpu.memory_space<vmem>>, vector<1x128xf32>
      tpu.vector_store %arg9[%c0_20, %c0_21], %36 {strides = array<i32>} : memref<1x128xf32, #tpu.memory_space<vmem>>, vector<1x128xf32>,
    } else {
    }
    %c1_i32 = arith.constant 1 : i32
    %17 = arith.cmpi eq, %arg0, %c1_i32 : i32
    %18 = arith.extui %17 : i1 to i32
    %cst_7 = arith.constant 0.00999999977 : f32
    %c0_i32_8 = arith.constant 0 : i32
    %19 = arith.cmpi ne, %18, %c0_i32_8 : i32
    scf.if %19 {
      %c0_11 = arith.constant 0 : index
      %c0_12 = arith.constant 0 : index
      %23 = vector.load %arg6[%c0_11, %c0_12] : memref<8x128xf32, #tpu.memory_space<vmem>>, vector<1x128xf32>
      %c1 = arith.constant 1 : index
      %c0_13 = arith.constant 0 : index
      %24 = vector.load %arg6[%c1, %c0_13] : memref<8x128xf32, #tpu.memory_space<vmem>>, vector<1x128xf32>
      %c0_14 = arith.constant 0 : index
      %c0_15 = arith.constant 0 : index
      %25 = vector.load %arg8[%c0_14, %c0_15] : memref<1x128xf32, #tpu.memory_space<vmem>>, vector<1x128xf32>
      %26 = vector.broadcast %cst_7 : f32 to vector<1x128xf32>
      %27 = arith.mulf %25, %26 : vector<1x128xf32>
      %c0_16 = arith.constant 0 : index
      %c0_17 = arith.constant 0 : index
      %28 = vector.load %arg9[%c0_16, %c0_17] : memref<1x128xf32, #tpu.memory_space<vmem>>, vector<1x128xf32>
      %29 = vector.broadcast %cst_7 : f32 to vector<1x128xf32>
      %30 = arith.mulf %28, %29 : vector<1x128xf32>
      %31 = arith.mulf %27, %27 : vector<1x128xf32>
      %32 = arith.subf %30, %31 : vector<1x128xf32>
      %cst_18 = arith.constant 0.000000e+00 : f32
      %33 = vector.broadcast %cst_18 : f32 to vector<1x128xf32>
      %34 = arith.maximumf %32, %33 : vector<1x128xf32>
      %cst_19 = arith.constant 9.99999974E-6 : f32
      %35 = vector.broadcast %cst_19 : f32 to vector<1x128xf32>
      %36 = arith.addf %34, %35 : vector<1x128xf32>
      %37 = math.rsqrt %36 : vector<1x128xf32>
      %38 = arith.mulf %23, %37 : vector<1x128xf32>
      %39 = arith.mulf %27, %38 : vector<1x128xf32>
      %40 = arith.subf %24, %39 : vector<1x128xf32>
      %41 = vector.broadcast %38 : vector<1x128xf32> to vector<16x128xf32>
      %42 = arith.mulf %13, %41 : vector<16x128xf32>
      %43 = vector.broadcast %40 : vector<1x128xf32> to vector<16x128xf32>
      %44 = arith.addf %42, %43 : vector<16x128xf32>
      %cst_20 = arith.constant 0.000000e+00 : f32
      %45 = vector.broadcast %cst_20 : f32 to vector<16x128xf32>
      %46 = arith.cmpf oge, %44, %45 : vector<16x128xf32>
      %cst_21 = arith.constant 0.00999999977 : f32
      %47 = vector.broadcast %cst_21 : f32 to vector<16x128xf32>
      %48 = arith.mulf %47, %44 : vector<16x128xf32>
      %49 = arith.select %46, %44, %48 : vector<16x128xi1>, vector<16x128xf32>
      %50 = arith.truncf %49 : vector<16x128xf32> to vector<16x128xbf16>
      %c0_22 = arith.constant 0 : index
      %c0_23 = arith.constant 0 : index
      %51 = vector.load %arg4[%c0_22, %c0_23] : memref<128x128xbf16, #tpu.memory_space<vmem>>, vector<128x128xbf16>
      %cst_24 = arith.constant dense<0.000000e+00> : vector<16x128xf32>
      %52 = tpu.matmul %50, %51, %cst_24 {dimension_numbers = #tpu.dot_dimension_numbers<[1], [0], [0], [1], [0, 0, 1, 1], [], []>} : vector<16x128xbf16>, vector<128x128xbf16>, vector<16x128xf32> -> vector<16x128xf32>
      %cst_25 = arith.constant 0.000000e+00 : f32
      %53 = vector.shape_cast %10 : vector<16x1xi1> to vector<16x1xi1>
      %54 = vector.broadcast %53 : vector<16x1xi1> to vector<16x128xi1>
      %55 = vector.broadcast %cst_25 : f32 to vector<16x128xf32>
      %56 = arith.select %54, %52, %55 : vector<16x128xi1>, vector<16x128xf32>
      %c0_26 = arith.constant 0 : index
      %c0_27 = arith.constant 0 : index
      %57 = vector.load %arg10[%c0_26, %c0_27] : memref<1x128xf32, #tpu.memory_space<vmem>>, vector<1x128xf32>
      %cst_28 = arith.constant dense<0.000000e+00> : vector<128xf32>
      %58 = vector.multi_reduction <add>, %56, %cst_28 [0] : vector<16x128xf32> to vector<128xf32>
      %59 = vector.shape_cast %58 : vector<128xf32> to vector<1x128xf32>
      %60 = arith.addf %57, %59 : vector<1x128xf32>
      %c0_29 = arith.constant 0 : index
      %c0_30 = arith.constant 0 : index
      %61 = vector.load %arg10[%c0_29, %c0_30] : memref<1x128xf32, #tpu.memory_space<vmem>>, vector<1x128xf32>
      tpu.vector_store %arg10[%c0_29, %c0_30], %60 {strides = array<i32>} : memref<1x128xf32, #tpu.memory_space<vmem>>, vector<1x128xf32>,
      %c0_31 = arith.constant 0 : index
      %c0_32 = arith.constant 0 : index
      %62 = vector.load %arg11[%c0_31, %c0_32] : memref<1x128xf32, #tpu.memory_space<vmem>>, vector<1x128xf32>
      %63 = arith.mulf %56, %56 : vector<16x128xf32>
      %cst_33 = arith.constant dense<0.000000e+00> : vector<128xf32>
      %64 = vector.multi_reduction <add>, %63, %cst_33 [0] : vector<16x128xf32> to vector<128xf32>
      %65 = vector.shape_cast %64 : vector<128xf32> to vector<1x128xf32>
      %66 = arith.addf %62, %65 : vector<1x128xf32>
      %c0_34 = arith.constant 0 : index
      %c0_35 = arith.constant 0 : index
      %67 = vector.load %arg11[%c0_34, %c0_35] : memref<1x128xf32, #tpu.memory_space<vmem>>, vector<1x128xf32>
      tpu.vector_store %arg11[%c0_34, %c0_35], %66 {strides = array<i32>} : memref<1x128xf32, #tpu.memory_space<vmem>>, vector<1x128xf32>,
    } else {
    }
    %c2_i32 = arith.constant 2 : i32
    %20 = arith.cmpi eq, %arg0, %c2_i32 : i32
    %21 = arith.extui %20 : i1 to i32
    %cst_9 = arith.constant 0.00999999977 : f32
    %c0_i32_10 = arith.constant 0 : i32
    %22 = arith.cmpi ne, %21, %c0_i32_10 : i32
    scf.if %22 {
      %c0_11 = arith.constant 0 : index
      %c0_12 = arith.constant 0 : index
      %23 = vector.load %arg6[%c0_11, %c0_12] : memref<8x128xf32, #tpu.memory_space<vmem>>, vector<1x128xf32>
      %c1 = arith.constant 1 : index
      %c0_13 = arith.constant 0 : index
      %24 = vector.load %arg6[%c1, %c0_13] : memref<8x128xf32, #tpu.memory_space<vmem>>, vector<1x128xf32>
      %c0_14 = arith.constant 0 : index
      %c0_15 = arith.constant 0 : index
      %25 = vector.load %arg8[%c0_14, %c0_15] : memref<1x128xf32, #tpu.memory_space<vmem>>, vector<1x128xf32>
      %26 = vector.broadcast %cst_9 : f32 to vector<1x128xf32>
      %27 = arith.mulf %25, %26 : vector<1x128xf32>
      %c0_16 = arith.constant 0 : index
      %c0_17 = arith.constant 0 : index
      %28 = vector.load %arg9[%c0_16, %c0_17] : memref<1x128xf32, #tpu.memory_space<vmem>>, vector<1x128xf32>
      %29 = vector.broadcast %cst_9 : f32 to vector<1x128xf32>
      %30 = arith.mulf %28, %29 : vector<1x128xf32>
      %31 = arith.mulf %27, %27 : vector<1x128xf32>
      %32 = arith.subf %30, %31 : vector<1x128xf32>
      %cst_18 = arith.constant 0.000000e+00 : f32
      %33 = vector.broadcast %cst_18 : f32 to vector<1x128xf32>
      %34 = arith.maximumf %32, %33 : vector<1x128xf32>
      %cst_19 = arith.constant 9.99999974E-6 : f32
      %35 = vector.broadcast %cst_19 : f32 to vector<1x128xf32>
      %36 = arith.addf %34, %35 : vector<1x128xf32>
      %37 = math.rsqrt %36 : vector<1x128xf32>
      %38 = arith.mulf %23, %37 : vector<1x128xf32>
      %39 = arith.mulf %27, %38 : vector<1x128xf32>
      %40 = arith.subf %24, %39 : vector<1x128xf32>
      %41 = vector.broadcast %38 : vector<1x128xf32> to vector<16x128xf32>
      %42 = arith.mulf %13, %41 : vector<16x128xf32>
      %43 = vector.broadcast %40 : vector<1x128xf32> to vector<16x128xf32>
      %44 = arith.addf %42, %43 : vector<16x128xf32>
      %cst_20 = arith.constant 0.000000e+00 : f32
      %45 = vector.broadcast %cst_20 : f32 to vector<16x128xf32>
      %46 = arith.cmpf oge, %44, %45 : vector<16x128xf32>
      %cst_21 = arith.constant 0.00999999977 : f32
      %47 = vector.broadcast %cst_21 : f32 to vector<16x128xf32>
      %48 = arith.mulf %47, %44 : vector<16x128xf32>
      %49 = arith.select %46, %44, %48 : vector<16x128xi1>, vector<16x128xf32>
      %50 = arith.truncf %49 : vector<16x128xf32> to vector<16x128xbf16>
      %c0_22 = arith.constant 0 : index
      %c0_23 = arith.constant 0 : index
      %51 = vector.load %arg4[%c0_22, %c0_23] : memref<128x128xbf16, #tpu.memory_space<vmem>>, vector<128x128xbf16>
      %cst_24 = arith.constant dense<0.000000e+00> : vector<16x128xf32>
      %52 = tpu.matmul %50, %51, %cst_24 {dimension_numbers = #tpu.dot_dimension_numbers<[1], [0], [0], [1], [0, 0, 1, 1], [], []>} : vector<16x128xbf16>, vector<128x128xbf16>, vector<16x128xf32> -> vector<16x128xf32>
      %c2 = arith.constant 2 : index
      %c0_25 = arith.constant 0 : index
      %53 = vector.load %arg6[%c2, %c0_25] : memref<8x128xf32, #tpu.memory_space<vmem>>, vector<1x128xf32>
      %c3 = arith.constant 3 : index
      %c0_26 = arith.constant 0 : index
      %54 = vector.load %arg6[%c3, %c0_26] : memref<8x128xf32, #tpu.memory_space<vmem>>, vector<1x128xf32>
      %c0_27 = arith.constant 0 : index
      %c0_28 = arith.constant 0 : index
      %55 = vector.load %arg10[%c0_27, %c0_28] : memref<1x128xf32, #tpu.memory_space<vmem>>, vector<1x128xf32>
      %56 = vector.broadcast %cst_9 : f32 to vector<1x128xf32>
      %57 = arith.mulf %55, %56 : vector<1x128xf32>
      %c0_29 = arith.constant 0 : index
      %c0_30 = arith.constant 0 : index
      %58 = vector.load %arg11[%c0_29, %c0_30] : memref<1x128xf32, #tpu.memory_space<vmem>>, vector<1x128xf32>
      %59 = vector.broadcast %cst_9 : f32 to vector<1x128xf32>
      %60 = arith.mulf %58, %59 : vector<1x128xf32>
      %61 = arith.mulf %57, %57 : vector<1x128xf32>
      %62 = arith.subf %60, %61 : vector<1x128xf32>
      %cst_31 = arith.constant 0.000000e+00 : f32
      %63 = vector.broadcast %cst_31 : f32 to vector<1x128xf32>
      %64 = arith.maximumf %62, %63 : vector<1x128xf32>
      %cst_32 = arith.constant 9.99999974E-6 : f32
      %65 = vector.broadcast %cst_32 : f32 to vector<1x128xf32>
      %66 = arith.addf %64, %65 : vector<1x128xf32>
      %67 = math.rsqrt %66 : vector<1x128xf32>
      %68 = arith.mulf %53, %67 : vector<1x128xf32>
      %69 = arith.mulf %57, %68 : vector<1x128xf32>
      %70 = arith.subf %54, %69 : vector<1x128xf32>
      %71 = vector.broadcast %68 : vector<1x128xf32> to vector<16x128xf32>
      %72 = arith.mulf %52, %71 : vector<16x128xf32>
      %73 = vector.broadcast %70 : vector<1x128xf32> to vector<16x128xf32>
      %74 = arith.addf %72, %73 : vector<16x128xf32>
      %cst_33 = arith.constant 0.000000e+00 : f32
      %75 = vector.broadcast %cst_33 : f32 to vector<16x128xf32>
      %76 = arith.cmpf oge, %74, %75 : vector<16x128xf32>
      %cst_34 = arith.constant 0.00999999977 : f32
      %77 = vector.broadcast %cst_34 : f32 to vector<16x128xf32>
      %78 = arith.mulf %77, %74 : vector<16x128xf32>
      %79 = arith.select %76, %74, %78 : vector<16x128xi1>, vector<16x128xf32>
      %80 = arith.truncf %79 : vector<16x128xf32> to vector<16x128xbf16>
      %c0_35 = arith.constant 0 : index
      %c0_36 = arith.constant 0 : index
      %81 = vector.load %arg5[%c0_35, %c0_36] : memref<128x128xbf16, #tpu.memory_space<vmem>>, vector<128x128xbf16>
      %cst_37 = arith.constant dense<0.000000e+00> : vector<16x128xf32>
      %82 = tpu.matmul %80, %81, %cst_37 {dimension_numbers = #tpu.dot_dimension_numbers<[1], [0], [0], [1], [0, 0, 1, 1], [], []>} : vector<16x128xbf16>, vector<128x128xbf16>, vector<16x128xf32> -> vector<16x128xf32>
      %c4 = arith.constant 4 : index
      %c0_38 = arith.constant 0 : index
      %83 = vector.load %arg6[%c4, %c0_38] : memref<8x128xf32, #tpu.memory_space<vmem>>, vector<1x128xf32>
      %84 = vector.broadcast %83 : vector<1x128xf32> to vector<16x128xf32>
      %85 = arith.addf %82, %84 : vector<16x128xf32>
      %c0_39 = arith.constant 0 : index
      %c0_40 = arith.constant 0 : index
      %86 = vector.load %arg7[%c0_39, %c0_40] : memref<16x128xf32, #tpu.memory_space<vmem>>, vector<16x128xf32>
      tpu.vector_store %arg7[%c0_39, %c0_40], %85 {strides = array<i32>} : memref<16x128xf32, #tpu.memory_space<vmem>>, vector<16x128xf32>,
    } else {
    }
    return
  }
  func.func @transform_0(%arg0: i32, %arg1: i32) -> (i32, i32) {
    %c0_i32 = arith.constant 0 : i32
    %c0_i32_0 = arith.constant 0 : i32
    return %arg1, %c0_i32 : i32, i32
  }
  func.func @transform_1(%arg0: i32, %arg1: i32) -> (i32, i32) {
    %c0_i32 = arith.constant 0 : i32
    %c0_i32_0 = arith.constant 0 : i32
    %c0_i32_1 = arith.constant 0 : i32
    return %c0_i32, %c0_i32_0 : i32, i32
  }
  func.func @transform_2(%arg0: i32, %arg1: i32) -> (i32, i32) {
    %c0_i32 = arith.constant 0 : i32
    %c0_i32_0 = arith.constant 0 : i32
    %c0_i32_1 = arith.constant 0 : i32
    return %c0_i32, %c0_i32_0 : i32, i32
  }
  func.func @transform_3(%arg0: i32, %arg1: i32) -> (i32, i32) {
    %c0_i32 = arith.constant 0 : i32
    %c0_i32_0 = arith.constant 0 : i32
    %c0_i32_1 = arith.constant 0 : i32
    return %c0_i32, %c0_i32_0 : i32, i32
  }
  func.func @transform_4(%arg0: i32, %arg1: i32) -> (i32, i32) {
    %c0_i32 = arith.constant 0 : i32
    %c0_i32_0 = arith.constant 0 : i32
    %c0_i32_1 = arith.constant 0 : i32
    return %c0_i32, %c0_i32_0 : i32, i32
  }
  func.func @transform_5(%arg0: i32, %arg1: i32) -> (i32, i32) {
    %c0_i32 = arith.constant 0 : i32
    %c0_i32_0 = arith.constant 0 : i32
    return %arg1, %c0_i32 : i32, i32
  }
}

</mosaic_0001>

<bundles_post_ra>
// kernel: tpu_custom_call.1
= control target key start
LH: loop header
LB: loop body
LE: loop exit
PB: predicated region body
PF: predicated region fallthrough
CT: control target
= control target key end

     0   :  { %s2008_s0 = inlined_call_operand.hbm [shape: bf16[112,128], index: 0, kind: input, shape index: {}]   ;;  %s2009_s1 = inlined_call_operand.hbm [shape: bf16[128,128], index: 1, kind: input, shape index: {}]   ;;  %s2010_s2 = inlined_call_operand.hbm [shape: bf16[128,128], index: 2, kind: input, shape index: {}]   ;;  %s2011_s3 = inlined_call_operand.hbm [shape: bf16[128,128], index: 3, kind: input, shape index: {}]   ;;  %s2012_s4 = inlined_call_operand.hbm [shape: f32[8,128], index: 4, kind: input, shape index: {}]   ;;  %s2013_s5 = inlined_call_operand.hbm [shape: f32[112,128], index: 5, kind: output, shape index: {}]  }
   0x1   :  { %2016 = sst [smem:[#allocation21_spill]] %s2009_s1 }
   0x2   :  { %2017 = sst [smem:[#allocation22_spill]] %s2010_s2 }
   0x3   :  { %2018 = sst [smem:[#allocation23_spill]] %s2011_s3 }
   0x4   :  { %2019 = sst [smem:[#allocation24_spill]] %s2012_s4 }
   0x5   :  { %10 = vsyncpa [#allocation7], 0 }
   0x6   :  { %12 = vsyncpa [#allocation7 + $0x1], 0 }
   0x7   :  { %13 = vsyncpa [#allocation10], 0 }
   0x8   :  { %14 = vsyncpa [#allocation13], 0 }
   0x9   :  { %15 = vsyncpa [#allocation8], 0 }
   0xa   :  { %17 = vsyncpa [#allocation8 + $0x1], 0  ;;  %s1703_s18 = smov 0   ;;  %s1705_s19 = smov 0  }
   0xb   :  { %s1707_s20 = smov 0   ;;  %s1709_s21 = smov 0  }
   0xc   :  { %s1711_s22 = smov 0   ;;  %s1713_s23 = smov 0  }
   0xd   :  { %s1715_s24 = smov 0   ;;  %s1717_s25 = smov 0  }
   0xe LB: > { %s1070_s26 = sadd.s32 4294967295, %s1654_s25   ;;  %s1071_s27 = sadd.s32 4294967294, %s1654_s25   ;;  %s1654_s25 = sphi %s1717_s25, %s23_s25   ;;  %s1650_s24 = sphi %s1715_s24, %s2044_s24   ;;  %s1646_s23 = sphi %s1713_s23, %s2043_s23   ;;  %s1642_s22 = sphi %s1711_s22, %s2042_s22   ;;  %s1638_s21 = sphi %s1709_s21, %s2041_s21   ;;  %s1634_s20 = sphi %s1707_s20, %s2040_s20   ;;  %s1630_s19 = sphi %s1705_s19, %s2039_s19   ;;  %s1626_s18 = sphi %s1703_s18, %s2038_s18  }
   0xf   : > { %p55_p0 = scmp.ne.s32.totalorder %s1630_s19, %s1626_s18  ;;  %p1747_p1 = scmp.eq.s32.totalorder %s1070_s26, 0 }
  0x10   : > { %p1751_p2 = scmp.eq.s32.totalorder %s1070_s26, 20  ;;  %p169_p3 = scmp.eq.s32.totalorder %s1071_s27, 20 }
  0x11   : > { %p1757_p4 = por %p1747_p1, %p55_p0  ;;  %p1072_p5 = scmp.ge.s32.totalorder %s1654_s25, 1 }
  0x12   : > { %p1762_p6 = por %p169_p3, %p55_p0  ;;  %p176_p7 = scmp.lt.s32.totalorder %s1654_s25, 22 }
  0x13   : > { %s1656_s8 = smov [#allocation9]   ;;  %s1657_s11 = smov [#allocation12]  }
  0x14   : > { %s2023_s6 = scalar_select %p1762_p6, 1, 0 }
  0x15   : > { %p1767_p8 = pnand %p1072_p5, %p176_p7  ;;  %s188_s9 = sshll.u32 %s1656_s8, 4  ;;  %s189_s9 = int_to_ptr.vmem [resolvable:$true] %s188_s9 }
  0x16   : > { %s214_s12 = sshll.u32 %s1657_s11, 4  ;;  %s1658_s13 = smov [#allocation11]   ;;  %s215_s12 = int_to_ptr.vmem [resolvable:$true] %s214_s12 }
  0x17   : > { %p1269_p9 = pneg %p1767_p8  ;;  %s201_s14 = sshll.u32 %s1658_s13, 4  ;;  %s202_s14 = int_to_ptr.vmem [resolvable:$true] %s201_s14 }
  0x18   : > { %s1429_s15 = scalar_lea.vmem %s189_s9, 1024  ;;  %p1437_p3 = scmp.lt.s32.totalorder %s189_s9, %s189_s9 }
  0x19   : > { %p1775_p10 = pnand %p1269_p9, %p1747_p1  ;;  %p1430_p12 = scmp.ne.s32.totalorder %s189_s9, %s1429_s15 }
  0x1a   : > { %p1438_p5 = scmp.lt.s32.totalorder %s1429_s15, %s1429_s15 }
  0x1b   : > { %p1420_p11 = pneg %p1775_p10 }
  0x1c   : > { %p1439_p7 = por %p1438_p5, %p1437_p3 }
  0x1d   : > { %p1432_p13 = pnand %p1430_p12, %p1420_p11 }
  0x1f   : > { %p1433_p0 = pneg %p1432_p13 }
  0x21   : > { %p1440_p9 = pnand %p1439_p7, %p1433_p0 }
  0x23   : > { %1443 = shalt.err (!%p1440_p9)
}
  0x24   : > { %s2014_s16 = smov 64   ;;  %s2015_s17 = smov 4  }
  0x25   : > { %s2026_s1 = sld [smem:[#allocation21_spill]]  ;;  %s1455_s8 = scalar_lea.vmem %s215_s12, 1024 }
  0x26   : > { %p1456_p12 = scmp.ne.s32.totalorder %s215_s12, %s1455_s8  ;;  %p1463_p0 = scmp.lt.s32.totalorder %s215_s12, %s215_s12 }
  0x27   : > { %p1464_p5 = scmp.lt.s32.totalorder %s1455_s8, %s1455_s8 }
  0x28   : > { %p1458_p13 = pnand %p1456_p12, %p1420_p11 }
  0x29   : > { %p1465_p7 = por %p1464_p5, %p1463_p0 }
  0x2a   : > { %p1459_p3 = pneg %p1458_p13 }
  0x2b   : > { %1272 = dma.hbm_to_vmem [thread:$0]  (!%p1775_p10), %s2026_s1, 1024, %s189_s9, [#allocation10], %s2014_s16, %s2014_s16, %s2015_s17  }
  0x2c   : > { %p1466_p9 = pnand %p1465_p7, %p1459_p3 }
  0x2e   : > { %1469 = shalt.err (!%p1466_p9)
}
  0x2f   : > { %s2027_s3 = sld [smem:[#allocation23_spill]]  ;;  %s1481_s9 = scalar_lea.vmem %s202_s14, 1024 }
  0x30   : > { %p1482_p6 = scmp.ne.s32.totalorder %s202_s14, %s1481_s9  ;;  %p1489_p0 = scmp.lt.s32.totalorder %s202_s14, %s202_s14 }
  0x31   : > { %p1490_p3 = scmp.lt.s32.totalorder %s1481_s9, %s1481_s9 }
  0x32   : > { %p1484_p12 = pnand %p1482_p6, %p1420_p11 }
  0x33   : > { %p1491_p5 = por %p1490_p3, %p1489_p0 }
  0x34   : > { %p1485_p13 = pneg %p1484_p12 }
  0x35   : > { %1278 = dma.hbm_to_vmem [thread:$0]  (!%p1775_p10), %s2027_s3, 1024, %s215_s12, [#allocation13], %s2014_s16, %s2014_s16, %s2015_s17  }
  0x36   : > { %p1492_p7 = pnand %p1491_p5, %p1485_p13 }
  0x38   : > { %1495 = shalt.err (!%p1492_p7)
}
  0x39   : > { %s2028_s2 = sld [smem:[#allocation22_spill]]  ;;  %s1661_s12 = smov [#allocation14]  }
  0x3a   : > { %s228_s27 = sshll.u32 %s1661_s12, 4  ;;  %s229_s27 = int_to_ptr.vmem [resolvable:$true] %s228_s27 }
  0x3b   : > { %s1507_s8 = scalar_lea.vmem %s229_s27, 128  ;;  %p1515_p13 = scmp.lt.s32.totalorder %s229_s27, %s229_s27 }
  0x3c   : > { %p1508_p6 = scmp.ne.s32.totalorder %s229_s27, %s1507_s8  ;;  %p1516_p0 = scmp.lt.s32.totalorder %s1507_s8, %s1507_s8 }
  0x3e   : > { %p1510_p9 = pnand %p1508_p6, %p1420_p11  ;;  %p1517_p3 = por %p1516_p0, %p1515_p13 }
  0x3f   : > { %1275 = dma.hbm_to_vmem [thread:$0]  (!%p1775_p10), %s2028_s2, 1024, %s202_s14, [#allocation10], %s2014_s16, %s2014_s16, %s2015_s17  }
  0x40   : > { %p1511_p12 = pneg %p1510_p9 }
  0x42   : > { %p1518_p5 = pnand %p1517_p3, %p1511_p12 }
  0x44   : > { %1521 = shalt.err (!%p1518_p5)
}
  0x45   : > { %s2029_s4 = sld [smem:[#allocation24_spill]]  ;;  %s32_s14 = sadd.s32 1, %s1646_s23 }
  0x46   : > { %s35_s9 = sadd.s32 1, %s1650_s24  ;;  %p33_p11 = scmp.ge.s32.totalorder %s32_s14, 7 }
  0x47   : > { %s42_s10 = sadd.s32 1, %s1634_s20  ;;  %p49_p7 = scmp.ne.s32.totalorder %s1634_s20, %s1630_s19 }
  0x48   : > { %p50_p6 = scmp.eq.s32.totalorder %s1654_s25, 0  ;;  %s2046_s14 = smov (%p33_p11, %s32_s14), 0 }
  0x49   : > { %s2048_s9 = smov (!%p33_p11, %s35_s9), %s1650_s24  ;;  %s39_s15 = ssub.s32 %s1646_s23, %s2046_s14 }
  0x4a   : > { %p1833_p9 = por %p50_p6, %p49_p7  ;;  %p40_p12 = scmp.eq.s32.totalorder %s39_s15, 0 }
  0x4b   : > { %1281 = dma.hbm_to_vmem [thread:$0]  (!%p1775_p10), %s2029_s4, 128, %s229_s27, [#allocation13]  }
  0x4c   : > { %p37_p10 = scmp.ge.s32.totalorder %s2048_s9, 3  ;;  %p1839_p13 = por %p1751_p2, %p49_p7 }
  0x4d   : > { %p1294_p0 = scmp.lt.s32.totalorder %s1654_s25, 21  ;;  %s239_s8 = sand.u32 1, %s1634_s20  }
  0x4e   : > { %s2050_s9 = smov (%p37_p10, %s2048_s9), 0  ;;  %s1131_s11 = sshll.u32 %s1646_s23, 7 }
  0x4f   : > { %2032 = sst [smem:[#allocation20_spill]] %s2050_s9  ;;  %s1078_s13 = sshll.u32 %s239_s8, 3 }
  0x50   : > { %s1847_s27 = scalar_select %p40_p12, %s1634_s20, %s42_s10  }
  0x51   : > { %s249_s1 = scalar_lea.hbm %s2008_s0, %s1131_s11  ;;  %s243_s2 = scalar_lea.vmem [#allocation6], %s1078_s13 }
  0x52   : > { %s250_s3 = sshll.u32 %s243_s2, 4  ;;  %p1856_p3 = pnand %p1294_p0, %p1833_p9  ;;  %s251_s3 = int_to_ptr.vmem [resolvable:$true] %s250_s3 }
  0x53   : > { %s240_s15 = scalar_lea.sflag [#allocation7], %s239_s8  ;;  %s1535_s10 = scalar_lea.vmem %s251_s3, 128 }
  0x54   : > { %p1524_p2 = pneg %p1856_p3  ;;  %p1536_p5 = scmp.ne.s32.totalorder %s251_s3, %s1535_s10 }
  0x55   : > { %s1662_s4 = smov [#allocation6]  }
  0x56   : > { %p1538_p11 = pnand %p1536_p5, %p1524_p2  ;;  %s1540_s9 = sshll.u32 %s1662_s4, 4  ;;  %s1541_s9 = int_to_ptr.vmem [resolvable:$false] %s1540_s9 }
  0x57   : > { %s1542_s16 = scalar_lea.vmem %s1541_s9, 256  ;;  %p1543_p6 = scmp.lt.s32.totalorder %s251_s3, %s1541_s9 }
  0x58   : > { %p1539_p7 = pneg %p1538_p11  ;;  %p1544_p10 = scmp.lt.s32.totalorder %s1542_s16, %s1535_s10 }
  0x5a   : > { %p1545_p12 = por %p1544_p10, %p1543_p6 }
  0x5c   : > { %p1546_p9 = pnand %p1545_p12, %p1539_p7 }
  0x5e   : > { %1549 = shalt.err (!%p1546_p9)
}
  0x5f   : > { %s2034_s2 = smov 4   ;;  %s2035_s17 = smov 64  }
  0x60   : > { %1285 = dma.hbm_to_vmem [thread:$0]  (!%p1856_p3), %s249_s1, 128, %s251_s3, %s240_s15, %s2035_s17, %s2035_s17, %s2034_s2  }
  0x61   : > { %262 = sbr.rel (%p1767_p8) target bundleno = 1115 (0x45b), region = 40  ;;  %s1870_s26 = sand.u32 (!%p1767_p8), 1, %s1630_s19  }
  0x62   : > { %s1082_s4 = sshll.u32 (!%p1767_p8), %s1870_s26, 3  ;;  %s265_s9 = scalar_lea.sflag (!%p1767_p8), [#allocation7], %s1870_s26 }
  0x63   : > { %s1874_s8 = scalar_lea.vmem (!%p1767_p8), [#allocation6], %s1082_s4 }
  0x66   : > { %1609 = dma.done.wait (%p1757_p4), %s265_s9, 128  }
  0x67   : > { %1611 = vsyncadd (%p1757_p4), %s265_s9, 4294967168 }
  0x68   : > { %1613 = dma.done.wait (%p1747_p1), [#allocation10], 2048  }
  0x69   : > { %1615 = vsyncadd (%p1747_p1), [#allocation10], 4294965248 }
  0x6a   : > { %1617 = dma.done.wait (%p1747_p1), [#allocation13], 1152  }
  0x6b   : > { %1619 = vsyncadd (%p1747_p1), [#allocation13], 4294966144  ;;  %s1087_s1 = sshll.u32 %s1870_s26, 4  ;;  %p314_p8 = scmp.eq.s32.totalorder %s1642_s22, 0 }
  0x6c   : > { %p315_p0 = scmp.eq.s32.totalorder %s1638_s21, 0  ;;  %s1891_s3 = scalar_lea.vmem [#allocation15], %s1087_s1 }
  0x6e   : > { %p316_p3 = pnand %p315_p0, %p314_p8 }
  0x70   : > { %319 = sbr.rel (%p316_p3) target bundleno = 120 (0x78), region = 64 }
  0x75   : > { %v1663_v0 = vmov 0.0  }
  0x76   : > { %320 = vst [vmem:[#allocation2] sm:$0x1] %v1663_v0  ;;  %321 = vst [vmem:[#allocation3] sm:$0x1] %v1663_v0 }
  0x77   : > { %322 = vst [vmem:[#allocation4] sm:$0x1] %v1663_v0  ;;  %323 = vst [vmem:[#allocation5] sm:$0x1] %v1663_v0 }
  0x78 PF: > { %v324_v1 = vlaneseq  ;;  %s1088_s28 = sshll.u32 %s1638_s21, 4  ;;  %v1664_v3 = vmov 0.0   ;;  %v1379_v4 = vld [vmem:[#allocation9 + $0x38] sm:$0xff]   ;;  %vm1665_vm0 = vmmov 0   ;;  %v1380_v6 = vld [vmem:[#allocation9 + $0x30] sm:$0xff]   ;;  %v1381_v10 = vld [vmem:[#allocation9 + $0x28] sm:$0xff]  }
  0x79   : > { %v328_v2 = vstv %s1088_s28  ;;  %1169 = vmatprep.subr.bf16.mxu0 %v1664_v3  ;;  %1185 = vmatprep.mubr.msk.bf16.mxu0 %vm1665_vm0, %v1664_v3  ;;  %v1382_v11 = vld [vmem:[#allocation9 + $0x20] sm:$0xff]   ;;  %v1383_v12 = vld [vmem:[#allocation9 + $0x18] sm:$0xff]   ;;  %v1384_v13 = vld [vmem:[#allocation9 + $0x10] sm:$0xff]   ;;  %p1098_p1 = scmp.ne.s32.totalorder %s1642_s22, 0 }
  0x7a   : > { %v1894_v5 = vshrl.u32 %v324_v1, 7  ;;  %1170 = vmatpush3.bf16.msra.mxu0 %v1379_v4  ;;  %v1385_v14 = vld [vmem:[#allocation9 + $0x8] sm:$0xff]   ;;  %v1386_v15 = vld [vmem:[#allocation9] sm:$0xff]   ;;  %v1387_v16 = vld [vmem:[%s1874_s8] sm:$0xff]  }
  0x7b   : > { %1171 = vmatprep.subr.bf16.mxu0 %v1664_v3 }
  0x7c   : > { %v326_v7 = vadd.s32 8, %v1894_v5  ;;  %v1898_v8 = vadd.s32 %v328_v2, %v1894_v5 }
  0x7e   : > { %v1900_v9 = vadd.s32 %v328_v2, %v326_v7  ;;  %vm331_vm1 = vcmp.lt.s32.totalorder %v1898_v8, 100  ;;  %1172 = vmatpush3.bf16.msra.mxu0 %v1380_v6 }
  0x7f   : > { %1173 = vmatprep.subr.bf16.mxu0 %v1664_v3 }
  0x80   : > { %vm332_vm2 = vcmp.lt.s32.totalorder %v1900_v9, 100 }
  0x82   : > { %1174 = vmatpush3.bf16.msra.mxu0 %v1381_v10 }
  0x83   : > { %1175 = vmatprep.subr.bf16.mxu0 %v1664_v3 }
  0x86   : > { %1176 = vmatpush3.bf16.msra.mxu0 %v1382_v11 }
  0x87   : > { %1177 = vmatprep.subr.bf16.mxu0 %v1664_v3 }
  0x8a   : > { %1178 = vmatpush3.bf16.msra.mxu0 %v1383_v12 }
  0x8b   : > { %1179 = vmatprep.subr.bf16.mxu0 %v1664_v3 }
  0x8e   : > { %1180 = vmatpush3.bf16.msra.mxu0 %v1384_v13 }
  0x8f   : > { %1181 = vmatprep.subr.bf16.mxu0 %v1664_v3 }
  0x92   : > { %1182 = vmatpush3.bf16.msra.mxu0 %v1385_v14 }
  0x93   : > { %1183 = vmatprep.subr.bf16.mxu0 %v1664_v3 }
  0x96   : > { %1184 = vmatpush3.bf16.msra.mxu0 %v1386_v15 }
  0x99   : > { %1186 = vmatmul.mubr.bf16.vlgmr.msra.gmra.mxu0 %v1387_v16 }
 0x159   : > { %v1905_v17 = vpop.f32.mrf.mxu0 }
 0x15b   : > { %v1187_v18 = vpop.f32.mrf.mxu0  ;;  %448 = sbr.rel (%p1098_p1) target bundleno = 372 (0x174), region = 68 }
 0x15d   : > { %v1907_v19 = vpop.f32.mrf.mxu0 }
 0x15f   : > { %v1188_v20 = vpop.f32.mrf.mxu0 }
 0x160   : > { %v453_v21 = vsel %vm331_vm1, %v1905_v17, 0.0  ;;  %v454_v22 = vsel %vm332_vm2, %v1907_v19, 0.0  ;;  %v455_v36 = vld [vmem:[#allocation2] sm:$0x1]  ;;  %v465_v39 = vld [vmem:[#allocation3] sm:$0x1] }
 0x161   : > { %v456_v23 = vadd.f32 %v454_v22, %v453_v21  ;;  %v466_v24 = vmul.f32 %v453_v21, %v453_v21  ;;  %v467_v25 = vmul.f32 %v454_v22, %v454_v22 }
 0x163   : > { %v457_v26 = vrot.slane %v456_v23, 4  ;;  %v468_v27 = vadd.f32 %v467_v25, %v466_v24 }
 0x165   : > { %v458_v28 = vadd.f32 %v457_v26, %v456_v23  ;;  %v469_v29 = vrot.slane %v468_v27, 4 }
 0x167   : > { %v459_v30 = vrot.slane %v458_v28, 2  ;;  %v470_v31 = vadd.f32 %v469_v29, %v468_v27 }
 0x169   : > { %v460_v32 = vadd.f32 %v459_v30, %v458_v28  ;;  %v471_v33 = vrot.slane %v470_v31, 2 }
 0x16b   : > { %v461_v34 = vrot.slane %v460_v32, 1  ;;  %v472_v35 = vadd.f32 %v471_v33, %v470_v31 }
 0x16d   : > { %v462_v37 = vadd.f32 %v461_v34, %v460_v32  ;;  %v473_v38 = vrot.slane %v472_v35, 1 }
 0x16f   : > { %v463_v40 = vadd.f32 %v462_v37, %v455_v36  ;;  %v474_v41 = vadd.f32 %v473_v38, %v472_v35 }
 0x171   : > { %464 = vst [vmem:[#allocation2] sm:$0x1] %v463_v40  ;;  %v475_v42 = vadd.f32 %v474_v41, %v465_v39 }
 0x173   : > { %476 = vst [vmem:[#allocation3] sm:$0x1] %v475_v42 }
 0x174 PF: > { %p1099_p4 = scmp.ne.s32.totalorder %s1642_s22, 1 }
 0x176   : > { %480 = sbr.rel (%p1099_p4) target bundleno = 637 (0x27d), region = 72 }
 0x17b   : > { %v1388_v43 = vld [vmem:[#allocation11 + $0x38] sm:$0xff]   ;;  %v1666_v44 = vmov 0.0   ;;  %v1389_v45 = vld [vmem:[#allocation11 + $0x30] sm:$0xff]   ;;  %vm1667_vm3 = vmmov 0   ;;  %v1390_v46 = vld [vmem:[#allocation11 + $0x28] sm:$0xff]   ;;  %v497_v61 = vsub.s32 0, %v1894_v5 }
 0x17c   : > { %1189 = vmatprep.subr.bf16.mxu0 %v1666_v44  ;;  %1205 = vmatprep.mubr.msk.bf16.mxu0 %vm1667_vm3, %v1666_v44  ;;  %v483_v47 = vld [vmem:[#allocation2] sm:$0x1]  ;;  %v485_v49 = vld [vmem:[#allocation3] sm:$0x1]  ;;  %v1391_v50 = vld [vmem:[#allocation11 + $0x20] sm:$0xff]  }
 0x17d   : > { %1190 = vmatpush3.bf16.msra.mxu0 %v1388_v43  ;;  %v484_v48 = vmul.f32 0.01, %v483_v47  ;;  %v486_v51 = vmul.f32 0.01, %v485_v49  ;;  %v1392_v54 = vld [vmem:[#allocation11 + $0x18] sm:$0xff]   ;;  %v1393_v57 = vld [vmem:[#allocation11 + $0x10] sm:$0xff]  }
 0x17e   : > { %1191 = vmatprep.subr.bf16.mxu0 %v1666_v44  ;;  %v1394_v58 = vld [vmem:[#allocation11 + $0x8] sm:$0xff]   ;;  %v1395_v59 = vld [vmem:[#allocation11] sm:$0xff]  }
 0x17f   : > { %v487_v52 = vmul.f32 %v484_v48, %v484_v48  ;;  %v481_v60 = vld [vmem:[#allocation14] sm:$0x1]  ;;  %v482_v0 = vld [vmem:[#allocation14 + $0x1] sm:$0x1]  ;;  %v625_v8 = vld [vmem:[#allocation4] sm:$0x1] }
 0x180   : > { %v635_v40 = vld [vmem:[#allocation5] sm:$0x1] }
 0x181   : > { %1192 = vmatpush3.bf16.msra.mxu0 %v1389_v45  ;;  %v488_v53 = vsub.f32 %v486_v51, %v487_v52 }
 0x182   : > { %1193 = vmatprep.subr.bf16.mxu0 %v1666_v44 }
 0x183   : > { %v489_v55 = vmax.f32 %v488_v53, 0.0 }
 0x185   : > { %1194 = vmatpush3.bf16.msra.mxu0 %v1390_v46  ;;  %v490_v56 = vadd.f32 1e-05, %v489_v55 }
 0x186   : > { %1195 = vmatprep.subr.bf16.mxu0 %v1666_v44 }
 0x187   : > { %1396 = vrsqrt.f32 %v490_v56 }
 0x189   : > { %1196 = vmatpush3.bf16.msra.mxu0 %v1391_v50 }
 0x18a   : > { %1197 = vmatprep.subr.bf16.mxu0 %v1666_v44 }
 0x18d   : > { %1198 = vmatpush3.bf16.msra.mxu0 %v1392_v54 }
 0x18e   : > { %1199 = vmatprep.subr.bf16.mxu0 %v1666_v44 }
 0x191   : > { %1200 = vmatpush3.bf16.msra.mxu0 %v1393_v57 }
 0x192   : > { %1201 = vmatprep.subr.bf16.mxu0 %v1666_v44 }
 0x194   : > { %v1397_v62 = vpop.eup %1396 }
 0x195   : > { %1202 = vmatpush3.bf16.msra.mxu0 %v1394_v58  ;;  %v492_v63 = vmul.f32 %v1397_v62, %v481_v60 }
 0x196   : > { %1203 = vmatprep.subr.bf16.mxu0 %v1666_v44 }
 0x197   : > { %v493_v1 = vmul.f32 %v492_v63, %v484_v48  ;;  %v498_v2 = vrot.slane %v492_v63, %v497_v61 }
 0x199   : > { %1204 = vmatpush3.bf16.msra.mxu0 %v1395_v59  ;;  %v494_v3 = vsub.f32 %v482_v0, %v493_v1  ;;  %v499_v4 = vmul.f32 %v498_v2, %v1905_v17  ;;  %v500_v6 = vmul.f32 %v498_v2, %v1907_v19 }
 0x19b   : > { %v504_v7 = vrot.slane %v494_v3, %v497_v61 }
 0x19d   : > { %v505_v10 = vadd.f32 %v504_v7, %v499_v4  ;;  %v506_v11 = vadd.f32 %v504_v7, %v500_v6 }
 0x19f   : > { %vm507_vm4 = vcmp.ge.f32.partialorder %v505_v10, 0.0  ;;  %vm508_vm5 = vcmp.ge.f32.partialorder %v506_v11, 0.0  ;;  %v509_v12 = vmul.f32 0.01, %v505_v10  ;;  %v510_v13 = vmul.f32 0.01, %v506_v11 }
 0x1a1   : > { %v511_v14 = vsel %vm507_vm4, %v505_v10, %v509_v12  ;;  %v512_v15 = vsel %vm508_vm5, %v506_v11, %v510_v13 }
 0x1a2   : > { %v513_v16 = vpack.c.bf16 %v512_v15, %v511_v14 }
 0x1a4   : > { %1206 = vmatmul.mubr.bf16.vlgmr.msra.gmra.mxu0 %v513_v16 }
 0x264   : > { %v612_v18 = vpop.f32.mrf.mxu0 }
 0x265   : > { %v623_v21 = vsel %vm331_vm1, %v612_v18, 0.0 }
 0x266   : > { %v1207_v20 = vpop.f32.mrf.mxu0  ;;  %v636_v24 = vmul.f32 %v623_v21, %v623_v21 }
 0x268   : > { %v615_v22 = vpop.f32.mrf.mxu0 }
 0x269   : > { %v624_v23 = vsel %vm332_vm2, %v615_v22, 0.0 }
 0x26a   : > { %v626_v25 = vadd.f32 %v624_v23, %v623_v21  ;;  %v637_v26 = vmul.f32 %v624_v23, %v624_v23  ;;  %v1208_v27 = vpop.f32.mrf.mxu0 }
 0x26c   : > { %v627_v28 = vrot.slane %v626_v25, 4  ;;  %v638_v29 = vadd.f32 %v637_v26, %v636_v24 }
 0x26e   : > { %v628_v30 = vadd.f32 %v627_v28, %v626_v25  ;;  %v639_v31 = vrot.slane %v638_v29, 4 }
 0x270   : > { %v629_v32 = vrot.slane %v628_v30, 2  ;;  %v640_v33 = vadd.f32 %v639_v31, %v638_v29 }
 0x272   : > { %v630_v34 = vadd.f32 %v629_v32, %v628_v30  ;;  %v641_v35 = vrot.slane %v640_v33, 2 }
 0x274   : > { %v631_v36 = vrot.slane %v630_v34, 1  ;;  %v642_v37 = vadd.f32 %v641_v35, %v640_v33 }
 0x276   : > { %v632_v38 = vadd.f32 %v631_v36, %v630_v34  ;;  %v643_v39 = vrot.slane %v642_v37, 1 }
 0x278   : > { %v633_v9 = vadd.f32 %v632_v38, %v625_v8  ;;  %v644_v41 = vadd.f32 %v643_v39, %v642_v37 }
 0x27a   : > { %634 = vst [vmem:[#allocation4] sm:$0x1] %v633_v9  ;;  %v645_v42 = vadd.f32 %v644_v41, %v635_v40 }
 0x27c   : > { %646 = vst [vmem:[#allocation5] sm:$0x1] %v645_v42 }
 0x27d PF: > { %p1108_p2 = scmp.ne.s32.totalorder %s1642_s22, 2 }
 0x27f   : > { %650 = sbr.rel (%p1108_p2) target bundleno = 1091 (0x443), region = 76 }
 0x284   : > { %v1398_v43 = vld [vmem:[#allocation11 + $0x38] sm:$0xff]   ;;  %v1668_v44 = vmov 0.0   ;;  %v1399_v45 = vld [vmem:[#allocation11 + $0x30] sm:$0xff]   ;;  %vm1669_vm6 = vmmov 0   ;;  %v1400_v46 = vld [vmem:[#allocation11 + $0x28] sm:$0xff]   ;;  %v667_v2 = vsub.s32 0, %v1894_v5 }
 0x285   : > { %1209 = vmatprep.subr.bf16.mxu0 %v1668_v44  ;;  %1229 = vmatprep.subr.bf16.mxu1 %v1668_v44  ;;  %v653_v47 = vld [vmem:[#allocation2] sm:$0x1]  ;;  %v655_v49 = vld [vmem:[#allocation3] sm:$0x1]  ;;  %v1401_v50 = vld [vmem:[#allocation11 + $0x20] sm:$0xff]  }
 0x286   : > { %1210 = vmatpush3.bf16.msra.mxu0 %v1398_v43  ;;  %1225 = vmatprep.mubr.msk.bf16.mxu0 %vm1669_vm6, %v1668_v44  ;;  %v654_v48 = vmul.f32 0.01, %v653_v47  ;;  %v656_v51 = vmul.f32 0.01, %v655_v49  ;;  %v1406_v52 = vld [vmem:[#allocation12 + $0x38] sm:$0xff]   ;;  %v1407_v54 = vld [vmem:[#allocation12 + $0x30] sm:$0xff]  }
 0x287   : > { %1211 = vmatprep.subr.bf16.mxu0 %v1668_v44  ;;  %1245 = vmatprep.mubr.msk.bf16.mxu1 %vm1669_vm6, %v1668_v44  ;;  %v1402_v56 = vld [vmem:[#allocation11 + $0x18] sm:$0xff]   ;;  %v1408_v58 = vld [vmem:[#allocation12 + $0x28] sm:$0xff]   ;;  %v1403_v60 = vld [vmem:[#allocation11 + $0x10] sm:$0xff]  }
 0x288   : > { %v657_v53 = vmul.f32 %v654_v48, %v654_v48  ;;  %1230 = vmatpush3.bf16.msra.mxu1 %v1406_v52  ;;  %v1409_v61 = vld [vmem:[#allocation12 + $0x20] sm:$0xff]   ;;  %v1404_v62 = vld [vmem:[#allocation11 + $0x8] sm:$0xff]   ;;  %v1410_v63 = vld [vmem:[#allocation12 + $0x18] sm:$0xff]  }
 0x289   : > { %1231 = vmatprep.subr.bf16.mxu1 %v1668_v44  ;;  %v1405_v0 = vld [vmem:[#allocation11] sm:$0xff]   ;;  %v1411_v23 = vld [vmem:[#allocation12 + $0x10] sm:$0xff]   ;;  %v1412_v24 = vld [vmem:[#allocation12 + $0x8] sm:$0xff]  }
 0x28a   : > { %1212 = vmatpush3.bf16.msra.mxu0 %v1399_v45  ;;  %v658_v55 = vsub.f32 %v656_v51, %v657_v53  ;;  %v651_v1 = vld [vmem:[#allocation14] sm:$0x1]  ;;  %v652_v6 = vld [vmem:[#allocation14 + $0x1] sm:$0x1]  ;;  %v793_v26 = vld [vmem:[#allocation5] sm:$0x1] }
 0x28b   : > { %1213 = vmatprep.subr.bf16.mxu0 %v1668_v44  ;;  %v794_v27 = vmul.f32 0.01, %v793_v26  ;;  %v789_v33 = vld [vmem:[#allocation14 + $0x2] sm:$0x1]  ;;  %v790_v36 = vld [vmem:[#allocation14 + $0x3] sm:$0x1] }
 0x28c   : > { %v659_v57 = vmax.f32 %v658_v55, 0.0  ;;  %1232 = vmatpush3.bf16.msra.mxu1 %v1407_v54  ;;  %v1117_v51 = vld [vmem:[#allocation14 + $0x4] ss:$0 sm:$0xff] }
 0x28d   : > { %1233 = vmatprep.subr.bf16.mxu1 %v1668_v44 }
 0x28e   : > { %1214 = vmatpush3.bf16.msra.mxu0 %v1400_v46  ;;  %v660_v59 = vadd.f32 1e-05, %v659_v57 }
 0x28f   : > { %1215 = vmatprep.subr.bf16.mxu0 %v1668_v44 }
 0x290   : > { %1414 = vrsqrt.f32 %v660_v59  ;;  %1234 = vmatpush3.bf16.msra.mxu1 %v1408_v58 }
 0x291   : > { %1235 = vmatprep.subr.bf16.mxu1 %v1668_v44 }
 0x292   : > { %1216 = vmatpush3.bf16.msra.mxu0 %v1401_v50 }
 0x293   : > { %1217 = vmatprep.subr.bf16.mxu0 %v1668_v44 }
 0x294   : > { %1236 = vmatpush3.bf16.msra.mxu1 %v1409_v61 }
 0x295   : > { %1237 = vmatprep.subr.bf16.mxu1 %v1668_v44 }
 0x296   : > { %1218 = vmatpush3.bf16.msra.mxu0 %v1402_v56 }
 0x297   : > { %1219 = vmatprep.subr.bf16.mxu0 %v1668_v44 }
 0x298   : > { %1238 = vmatpush3.bf16.msra.mxu1 %v1410_v63 }
 0x299   : > { %1239 = vmatprep.subr.bf16.mxu1 %v1668_v44 }
 0x29a   : > { %1220 = vmatpush3.bf16.msra.mxu0 %v1403_v60 }
 0x29b   : > { %1221 = vmatprep.subr.bf16.mxu0 %v1668_v44 }
 0x29c   : > { %1240 = vmatpush3.bf16.msra.mxu1 %v1411_v23 }
 0x29d   : > { %v1415_v3 = vpop.eup %1414  ;;  %1241 = vmatprep.subr.bf16.mxu1 %v1668_v44 }
 0x29e   : > { %1222 = vmatpush3.bf16.msra.mxu0 %v1404_v62  ;;  %v662_v4 = vmul.f32 %v1415_v3, %v651_v1 }
 0x29f   : > { %1223 = vmatprep.subr.bf16.mxu0 %v1668_v44 }
 0x2a0   : > { %v663_v7 = vmul.f32 %v662_v4, %v654_v48  ;;  %v668_v10 = vrot.slane %v662_v4, %v667_v2  ;;  %1242 = vmatpush3.bf16.msra.mxu1 %v1412_v24 }
 0x2a1   : > { %1243 = vmatprep.subr.bf16.mxu1 %v1668_v44 }
 0x2a2   : > { %1224 = vmatpush3.bf16.msra.mxu0 %v1405_v0  ;;  %v664_v11 = vsub.f32 %v652_v6, %v663_v7  ;;  %v669_v12 = vmul.f32 %v668_v10, %v1905_v17  ;;  %v670_v13 = vmul.f32 %v668_v10, %v1907_v19  ;;  %v1413_v17 = vld [vmem:[#allocation12] sm:$0xff]   ;;  %v791_v19 = vld [vmem:[#allocation4] sm:$0x1] }
 0x2a3   : > { %v792_v25 = vmul.f32 0.01, %v791_v19 }
 0x2a4   : > { %v674_v14 = vrot.slane %v664_v11, %v667_v2  ;;  %1244 = vmatpush3.bf16.msra.mxu1 %v1413_v17 }
 0x2a5   : > { %v795_v28 = vmul.f32 %v792_v25, %v792_v25 }
 0x2a6   : > { %v675_v15 = vadd.f32 %v674_v14, %v669_v12  ;;  %v676_v16 = vadd.f32 %v674_v14, %v670_v13 }
 0x2a7   : > { %v796_v29 = vsub.f32 %v794_v27, %v795_v28 }
 0x2a8   : > { %vm677_vm7 = vcmp.ge.f32.partialorder %v675_v15, 0.0  ;;  %vm678_vm8 = vcmp.ge.f32.partialorder %v676_v16, 0.0  ;;  %v679_v18 = vmul.f32 0.01, %v675_v15  ;;  %v680_v20 = vmul.f32 0.01, %v676_v16 }
 0x2a9   : > { %v797_v30 = vmax.f32 %v796_v29, 0.0 }
 0x2aa   : > { %v681_v21 = vsel %vm677_vm7, %v675_v15, %v679_v18  ;;  %v682_v22 = vsel %vm678_vm8, %v676_v16, %v680_v20 }
 0x2ab   : > { %v683_v5 = vpack.c.bf16 %v682_v22, %v681_v21  ;;  %v798_v31 = vadd.f32 1e-05, %v797_v30 }
 0x2ad   : > { %1226 = vmatmul.mubr.bf16.vlgmr.msra.gmra.mxu0 %v683_v5  ;;  %1416 = vrsqrt.f32 %v798_v31 }
 0x2ba   : > { %v1417_v32 = vpop.eup %1416 }
 0x2bb   : > { %v800_v34 = vmul.f32 %v1417_v32, %v789_v33 }
 0x2bd   : > { %v801_v35 = vmul.f32 %v800_v34, %v792_v25  ;;  %v806_v8 = vrot.slane %v800_v34, %v667_v2 }
 0x2bf   : > { %v802_v37 = vsub.f32 %v790_v36, %v801_v35 }
 0x2c1   : > { %v812_v38 = vrot.slane %v802_v37, %v667_v2 }
 0x36d   : > { %v782_v39 = vpop.f32.mrf.mxu0 }
 0x36e   : > { %v807_v40 = vmul.f32 %v806_v8, %v782_v39 }
 0x36f   : > { %v1227_v9 = vpop.f32.mrf.mxu0 }
 0x370   : > { %v813_v41 = vadd.f32 %v812_v38, %v807_v40 }
 0x371   : > { %v785_v42 = vpop.f32.mrf.mxu0 }
 0x372   : > { %v808_v43 = vmul.f32 %v806_v8, %v785_v42  ;;  %v817_v45 = vmul.f32 0.01, %v813_v41  ;;  %vm815_vm9 = vcmp.ge.f32.partialorder %v813_v41, 0.0 }
 0x373   : > { %v1228_v44 = vpop.f32.mrf.mxu0 }
 0x374   : > { %v814_v46 = vadd.f32 %v812_v38, %v808_v43  ;;  %v819_v48 = vsel %vm815_vm9, %v813_v41, %v817_v45 }
 0x376   : > { %vm816_vm10 = vcmp.ge.f32.partialorder %v814_v46, 0.0  ;;  %v818_v47 = vmul.f32 0.01, %v814_v46 }
 0x378   : > { %v820_v49 = vsel %vm816_vm10, %v814_v46, %v818_v47 }
 0x379   : > { %v821_v50 = vpack.c.bf16 %v820_v49, %v819_v48 }
 0x37b   : > { %1246 = vmatmul.mubr.bf16.vlgmr.msra.gmra.mxu1 %v821_v50 }
 0x43b   : > { %v925_v52 = vpop.f32.mrf.mxu1 }
 0x43c   : > { %v926_v53 = vadd.f32 %v1117_v51, %v925_v52 }
 0x43d   : > { %v1247_v54 = vpop.f32.mrf.mxu1 }
 0x43e   : > { %932 = vst [vmem:[%s1891_s3] sm:$0xff] %v926_v53 }
 0x43f   : > { %v928_v55 = vpop.f32.mrf.mxu1 }
 0x440   : > { %v929_v56 = vadd.f32 %v1117_v51, %v928_v55 }
 0x441   : > { %v1248_v57 = vpop.f32.mrf.mxu1 }
 0x442   : > { %933 = vst [vmem:[%s1891_s3 + $0x8] sm:$0xff] %v929_v56 }
 0x443 PF: > { %s1132_s22 = sshll.u32 %s1638_s21, 8  ;;  %s948_s13 = sshll.u32 %s1891_s3, 4  ;;  %s1955_s13 = int_to_ptr.vmem [resolvable:$true] %s948_s13 }
 0x444   : > { %s1952_s11 = scalar_lea.hbm %s2013_s5, %s1132_s22  ;;  %s935_s29 = scalar_lea.sflag [#allocation8], %s1870_s26 }
 0x445   : > { %s1550_s15 = scalar_lea.vmem %s1955_s13, 256  ;;  %s1670_s10 = smov [#allocation15]  }
 0x446   : > { %p1551_p5 = scmp.ne.s32.totalorder %s1955_s13, %s1550_s15  ;;  %s1554_s16 = sshll.u32 %s1670_s10, 4  ;;  %s1555_s16 = int_to_ptr.vmem [resolvable:$false] %s1554_s16 }
 0x447   : > { %s1556_s21 = scalar_lea.vmem %s1555_s16, 512  ;;  %p1557_p6 = scmp.lt.s32.totalorder %s1955_s13, %s1555_s16 }
 0x448   : > { %p1552_p11 = pnand %p1551_p5, %p1839_p13  ;;  %p1558_p10 = scmp.lt.s32.totalorder %s1556_s21, %s1550_s15 }
 0x44a   : > { %p1553_p7 = pneg %p1552_p11  ;;  %p1559_p12 = por %p1558_p10, %p1557_p6 }
 0x44c   : > { %p1560_p9 = pnand %p1559_p12, %p1553_p7 }
 0x44e   : > { %1563 = shalt.err (!%p1560_p9)
}
 0x44f   : > { %s1564_s2 = scalar_lea.hbm %s1952_s11, 256  ;;  %s1568_s9 = scalar_lea.hbm %s2013_s5, 1792 }
 0x450   : > { %p1565_p8 = scmp.ne.s32.totalorder %s1952_s11, %s1564_s2  ;;  %p1569_p1 = scmp.lt.s32.totalorder %s1952_s11, %s2013_s5 }
 0x451   : > { %p1570_p4 = scmp.lt.s32.totalorder %s1568_s9, %s1564_s2 }
 0x452   : > { %p1566_p0 = pnand %p1565_p8, %p1839_p13 }
 0x453   : > { %p1571_p2 = por %p1570_p4, %p1569_p1 }
 0x454   : > { %p1567_p3 = pneg %p1566_p0 }
 0x456   : > { %p1572_p5 = pnand %p1571_p2, %p1567_p3 }
 0x458   : > { %1575 = shalt.err (!%p1572_p5)
}
 0x459   : > { %s1671_s3 = smov 128   ;;  %s1672_s28 = smov 8  }
 0x45a   : > { %1267 = dma.vmem_to_hbm [thread:$0]  (%p1839_p13), %s1955_s13, 256, %s1952_s11, %s935_s29, %s1671_s3, %s1671_s3, %s1672_s28  }
 0x45b PF: > { %p1299_p11 = scmp.ge.s32.totalorder %s1654_s25, 2  ;;  %s963_s22 = sand.u32 1, %s1626_s18  }
 0x45c   : > { %p2036_p7 = scmp.ne.s32.totalorder %s2023_s6, 0  ;;  %s964_s30 = scalar_lea.sflag [#allocation8], %s963_s22 }
 0x45e   : > { %p1287_p6 = pnand %p1299_p11, %p2036_p7 }
 0x460   : > { %p1288_p10 = pneg %p1287_p6 }
 0x462   : > { %1621 = dma.done.wait (%p1288_p10), %s964_s30, 256  }
 0x463   : > { %1623 = vsyncadd (%p1288_p10), %s964_s30, 4294967040  ;;  %s23_s25 = sadd.s32 1, %s1654_s25   ;;  %s2037_s12 = sld [smem:[#allocation20_spill]] }
 0x464   : > { %p20_p12 = scmp.ge.s32.totalorder %s23_s25, 23   ;;  %s2038_s18 = smov %s1630_s19 }
 0x465   : > { %s2039_s19 = smov %s1634_s20  ;;  %s2040_s20 = smov %s1847_s27 }
 0x466   : > { %s2041_s21 = smov %s1646_s23  ;;  %s2042_s22 = smov %s1650_s24 }
 0x467   : > { %s2043_s23 = smov %s2046_s14  ;;  %22 = sbr.rel (!%p20_p12) target bundleno = 14 (0xe), region = 117 }
 0x469   : > { %s2044_s24 = smov %s2037_s12 }
 0x46c   :  { %969 = vsyncpa [#allocation7], 1 }
 0x46d   :  { %971 = vsyncpa [#allocation7 + $0x1], 1 }
 0x46e   :  { %972 = vsyncpa [#allocation10], 1 }
 0x46f   :  { %973 = vsyncpa [#allocation13], 1 }
 0x470   :  { %974 = vsyncpa [#allocation8], 1 }
 0x471   :  { %976 = vsyncpa [#allocation8 + $0x1], 1 }

</bundles_post_ra>
